<compile_context>
chip_gen: v5e
topology: v5e:2x2
jax: 0.10.0
libtpu: 0.0.40
codegen_flags: <defaults>
</compile_context>

<pallas_src>
import functools

import jax
import jax.numpy as jnp
import numpy as np
from jax.experimental import pallas as pl
from jax.experimental.pallas import tpu as pltpu


def _round_up(n, m):
    return ((n + m - 1) // m) * m


def _cdiv(a, b):
    return (a + b - 1) // b


# ---------------------------------------------------------------------------
# Kernel
# ---------------------------------------------------------------------------
def policy_kernel(x_ref, wenc_ref, benc_ref, whead_ref, bhead_ref,
                  w2_ref, b2_ref, w3_ref, b3_ref, out_ref,
                  *, num_actions, hp):
    cdt = whead_ref.dtype  # MXU operand dtype for the head matmuls (f32 or bf16)

    x = x_ref[...]         # (TB, d_in), streamed at its native HBM precision

    # --- encoder: Linear + ReLU (f32 accumulation, f32 elementwise); output lane-padded ---
    feat = jnp.dot(x, wenc_ref[...], preferred_element_type=jnp.float32) + benc_ref[...]
    feat = jnp.maximum(feat, 0.0)                       # (TB, FP), FP = 128-padded feature_dim

    # --- fused head: lanes [0:HP] = BN1-folded value layer-1, lanes [HP:HP+NA] = policy logits ---
    head = jnp.dot(feat.astype(cdt), whead_ref[...],
                   preferred_element_type=jnp.float32) + bhead_ref[...]
    h1 = jnp.maximum(head[:, :hp], 0.0)                 # lane-group-aligned (TB, HP) slab
    logits = head[:, hp:hp + num_actions]

    # --- Categorical(logits): stable log_softmax ---
    m = jnp.max(logits, axis=-1, keepdims=True)
    z = logits - m
    lse = jnp.log(jnp.sum(jnp.exp(z), axis=-1, keepdims=True))
    logp = z - lse

    # --- value head stage 2 (BN2 folded into w2) + final projection (lane-padded) ---
    h2 = jnp.maximum(
        jnp.dot(h1.astype(cdt), w2_ref[...], preferred_element_type=jnp.float32) + b2_ref[...],
        0.0)
    vcol = jnp.dot(h2.astype(cdt), w3_ref[...],
                   preferred_element_type=jnp.float32) + b3_ref[...]

    # single lane-dense (TB, 128) store: logits | log_probs | value (col 0 of vcol) | zero pad
    # (concat at sub-128 lane offsets is XLU work, hidden under the x DMA -- kernel is mem-bound)
    out_ref[...] = jnp.concatenate([logits, logp, vcol], axis=-1)


# ---------------------------------------------------------------------------
# Host-side parameter fusion (BN folding, head fusion, 128-lane padding)
# ---------------------------------------------------------------------------
def prepare_fused_params(p, compute_dtype=jnp.float32, eps=1e-5):
    d_in, feature_dim = p["wenc"].shape
    hidden = p["w1"].shape[1]
    num_actions = p["wpol"].shape[1]

    assert 2 * num_actions + 1 <= 128, "output slab assumes 2*NA + 1 <= 128"
    FP = _round_up(feature_dim, 128)   # lane-padded feature dim -> K >= 128 for head matmul
    HP = _round_up(hidden, 128)        # lane-padded hidden dim  -> K >= 128 for w2/w3 matmuls
    OUT_W = 128                        # output slab lanes: [logits | log_probs | value | pad]
    VW = OUT_W - 2 * num_actions
    HEAD_W = HP + 128                  # fused head lanes: [h1 (HP) | logits (NA) | pad]

    f32 = jnp.float32

    # BatchNorm1d(feature_dim) folded into Linear(feature_dim, hidden, bias=False)
    s1 = p["g1"][0] * jax.lax.rsqrt(p["v1"][0] + eps)
    sh1 = p["b1"][0] - p["m1"][0] * s1
    w1f = s1[:, None] * p["w1"]
    b1f = sh1 @ p["w1"]

    # BatchNorm1d(hidden) folded into Linear(hidden, hidden, bias=False)
    s2 = p["g2"][0] * jax.lax.rsqrt(p["v2"][0] + eps)
    sh2 = p["b2"][0] - p["m2"][0] * s2
    w2f = s2[:, None] * p["w2"]
    b2f = sh2 @ p["w2"]

    # encoder padded to FP output lanes (zero extra columns/bias -> feat pad lanes are exactly 0)
    wenc_p = jnp.zeros((d_in, FP), f32).at[:, :feature_dim].set(p["wenc"])
    benc_p = jnp.zeros((1, FP), f32).at[0, :feature_dim].set(p["benc"][0])

    # fused head weight/bias: lanes [0:HP] = padded w1f, lanes [HP:HP+NA] = policy head
    whead = jnp.zeros((FP, HEAD_W), f32)
    whead = whead.at[:feature_dim, :hidden].set(w1f)
    whead = whead.at[:feature_dim, HP:HP + num_actions].set(p["wpol"])
    bhead = jnp.zeros((1, HEAD_W), f32)
    bhead = bhead.at[0, :hidden].set(b1f)
    bhead = bhead.at[0, HP:HP + num_actions].set(p["bpol"][0])

    # BN2-folded second value layer, padded to (HP, HP)
    w2p = jnp.zeros((HP, HP), f32).at[:hidden, :hidden].set(w2f)
    b2p = jnp.zeros((1, HP), f32).at[0, :hidden].set(b2f)

    # final value projection padded so its output fills the remaining slab lanes
    w3p = jnp.zeros((HP, VW), f32).at[:hidden, 0].set(p["w3"][:, 0])
    b3p = jnp.zeros((1, VW), f32).at[0, 0].set(p["b3"][0, 0])

    return {
        "wenc": wenc_p.astype(compute_dtype),
        "benc": benc_p,                       # biases stay f32 (added post-accumulation)
        "whead": whead.astype(compute_dtype),
        "bhead": bhead,
        "w2": w2p.astype(compute_dtype),
        "b2": b2p,
        "w3": w3p.astype(compute_dtype),
        "b3": b3p,
        "num_actions": num_actions,
        "fp_dim": FP,
        "hp_dim": HP,
        "d_in": d_in,
        "compute_dtype": compute_dtype,
    }


# ---------------------------------------------------------------------------
# Wrapper
# ---------------------------------------------------------------------------
def _choose_tb(B, d_in, x_itemsize, resident_bytes):
    # Target <=512-row tiles, minimize padding, and keep >=2 grid steps when the batch is big
    # enough so dimension_semantics=("parallel",) can shard across v7x's two TensorCores.
    n_tiles = max(_cdiv(B, 512), 2 if B >= 32 else 1)
    tb = _round_up(_cdiv(B, n_tiles), 16)     # multiple of 16 (bf16-safe sublane tiling)
    tb = min(tb, _round_up(B, 16))
    # keep double-buffered x/out tiles + resident weights comfortably inside ~40 MiB of VMEM
    budget = (40 << 20) - 2 * resident_bytes - (2 << 20)
    per_row = 2 * d_in * x_itemsize + 2 * 128 * 4
    max_tb = max(16, (budget // per_row) // 16 * 16)
    return int(max(16, min(tb, max_tb)))


def policy_forward(x_nchw, fp):
    B = x_nchw.shape[0]
    NA = fp["num_actions"]
    d_in = fp["d_in"]
    FP = fp["fp_dim"]
    HP = fp["hp_dim"]
    HEAD_W = fp["whead"].shape[1]
    VW = fp["w3"].shape[1]
    OUT_W = 2 * NA + VW                      # = 128

    # Flatten NCHW row-major. No dtype cast and no batch pad here: either would re-stream the
    # whole (B, d_in) tensor through HBM before the kernel (which is bound on that stream) reads it.
    x_flat = x_nchw.reshape(B, -1)
    x_bytes = x_flat.dtype.itemsize

    w_arrs = (fp["wenc"], fp["whead"], fp["w2"], fp["w3"],
              fp["benc"], fp["bhead"], fp["b2"], fp["b3"])
    resident_bytes = int(sum(int(a.size) * a.dtype.itemsize for a in w_arrs))

    TB = _choose_tb(B, d_in, x_bytes, resident_bytes)
    grid = (_cdiv(B, TB),)                   # ragged last tile handled by Pallas block masking

    in_specs = [
        pl.BlockSpec((TB, d_in), lambda i: (i, 0)),            # x: tiled over batch, pipelined
        # constant index maps -> weights stay VMEM-resident, never re-DMA'd
        # TODO(synk): add pipeline_mode=pl.Buffered(1) on these constant blocks to single-buffer
        #             them when d_in is large enough for their double-buffer to pressure VMEM.
        pl.BlockSpec((d_in, FP), lambda i: (0, 0)),
        pl.BlockSpec((1, FP), lambda i: (0, 0)),
        pl.BlockSpec((FP, HEAD_W), lambda i: (0, 0)),
        pl.BlockSpec((1, HEAD_W), lambda i: (0, 0)),
        pl.BlockSpec((HP, HP), lambda i: (0, 0)),
        pl.BlockSpec((1, HP), lambda i: (0, 0)),
        pl.BlockSpec((HP, VW), lambda i: (0, 0)),
        pl.BlockSpec((1, VW), lambda i: (0, 0)),
    ]
    out_specs = pl.BlockSpec((TB, OUT_W), lambda i: (i, 0))

    flops = 2 * B * (d_in * FP + FP * HEAD_W + HP * HP + HP * VW)
    bytes_accessed = B * d_in * x_bytes + resident_bytes + B * OUT_W * 4
    cost = pl.CostEstimate(flops=int(flops),
                           transcendentals=int(B * (NA + 1)),
                           bytes_accessed=int(bytes_accessed))

    # VMEM budget: double-buffered x/out tiles + (double-buffered) resident weights + ~4 MiB
    # headroom, capped at 48 MiB so we never request all of v7x's 64 MiB per-TensorCore VMEM.
    vmem_need = 2 * TB * d_in * x_bytes + 2 * TB * OUT_W * 4 + 2 * resident_bytes
    vmem_limit = int(min(48 << 20, vmem_need + (4 << 20)))

    kernel = functools.partial(policy_kernel, num_actions=NA, hp=HP)

    slab = pl.pallas_call(
        kernel,
        out_shape=jax.ShapeDtypeStruct((B, OUT_W), jnp.float32),
        grid=grid,
        in_specs=in_specs,
        out_specs=out_specs,
        compiler_params=pltpu.CompilerParams(
            dimension_semantics=("parallel",),
            vmem_limit_bytes=vmem_limit),
        cost_estimate=cost,
    )(x_flat, fp["wenc"], fp["benc"], fp["whead"], fp["bhead"],
      fp["w2"], fp["b2"], fp["w3"], fp["b3"])

    logits = slab[:, :NA]
    log_probs = slab[:, NA:2 * NA]
    value = slab[:, 2 * NA]                  # value.squeeze(1)
    return logits, log_probs, value


# ---------------------------------------------------------------------------
# Parameter construction + pure-JAX reference (unfused, eval mode)
# ---------------------------------------------------------------------------
def make_params(key, d_in, feature_dim, num_actions, hidden=64):
    ks = jax.random.split(key, 8)
    orth = jax.nn.initializers.orthogonal(scale=0.01)
    return {
        # encoder: Flatten + Linear(d_in, feature_dim) + ReLU
        "wenc": jax.random.normal(ks[0], (d_in, feature_dim), jnp.float32) * 0.02,
        "benc": jnp.zeros((1, feature_dim), jnp.float32),
        # policy head: orthogonal init, gain=0.01, bias=0
        "wpol": orth(ks[1], (feature_dim, num_actions), jnp.float32),
        "bpol": jnp.zeros((1, num_actions), jnp.float32),
        # BatchNorm1d(feature_dim) -- fresh-module defaults
        "g1": jnp.ones((1, feature_dim), jnp.float32),
        "b1": jnp.zeros((1, feature_dim), jnp.float32),
        "m1": jnp.zeros((1, feature_dim), jnp.float32),
        "v1": jnp.ones((1, feature_dim), jnp.float32),
        # Linear(feature_dim, 64, bias=False)
        "w1": jax.random.normal(ks[2], (feature_dim, hidden), jnp.float32) * 0.05,
        # BatchNorm1d(64)
        "g2": jnp.ones((1, hidden), jnp.float32),
        "b2": jnp.zeros((1, hidden), jnp.float32),
        "m2": jnp.zeros((1, hidden), jnp.float32),
        "v2": jnp.ones((1, hidden), jnp.float32),
        # Linear(64, 64, bias=False)
        "w2": jax.random.normal(ks[3], (hidden, hidden), jnp.float32) * 0.05,
        # Linear(64, 1)
        "w3": jax.random.normal(ks[4], (hidden, 1), jnp.float32) * 0.05,
        "b3": jnp.zeros((1, 1), jnp.float32),
    }


def reference_forward(x_nchw, p):
    B = x_nchw.shape[0]
    x = x_nchw.reshape(B, -1).astype(jnp.float32)
    feat = jnp.maximum(x @ p["wenc"] + p["benc"], 0.0)
    logits = feat @ p["wpol"] + p["bpol"]
    log_probs = jax.nn.log_softmax(logits, axis=-1)
    eps = 1e-5
    h = (feat - p["m1"]) / jnp.sqrt(p["v1"] + eps) * p["g1"] + p["b1"]
    h = jnp.maximum(h @ p["w1"], 0.0)
    h = (h - p["m2"]) / jnp.sqrt(p["v2"] + eps) * p["g2"] + p["b2"]
    h = jnp.maximum(h @ p["w2"], 0.0)
    value = (h @ p["w3"] + p["b3"])[:, 0]
    return logits, log_probs, value


if __name__ == "__main__":
    B, C, H, W = 2, 4, 16, 16
    feature_dim, num_actions = 32, 8
    d_in = C * H * W

    key = jax.random.PRNGKey(0)
    k_x, k_p = jax.random.split(key)
    x = jax.random.normal(k_x, (B, C, H, W), jnp.float32)
    params = make_params(k_p, d_in, feature_dim, num_actions)
    r_logits, r_log_probs, r_value = reference_forward(x, params)

    # ---- f32 path (x streamed at its native f32, no wrapper cast/pad) ----
    fused_f32 = prepare_fused_params(params, compute_dtype=jnp.float32)
    logits, log_probs, value = jax.block_until_ready(policy_forward(x, fused_f32))

    np.testing.assert_allclose(np.asarray(logits), np.asarray(r_logits), rtol=1e-4, atol=1e-4)
    np.testing.assert_allclose(np.asarray(log_probs), np.asarray(r_log_probs), rtol=1e-4, atol=1e-4)
    np.testing.assert_allclose(np.asarray(value), np.asarray(r_value), rtol=1e-4, atol=1e-4)
    assert logits.shape == (B, num_actions)
    assert log_probs.shape == (B, num_actions)
    assert value.shape == (B,)

    # ---- bf16 path: x already bf16 in HBM (simulated upstream producer), bf16 MXU operands ----
    fused_bf16 = prepare_fused_params(params, compute_dtype=jnp.bfloat16)
    x_bf16 = x.astype(jnp.bfloat16)
    logits_b, log_probs_b, value_b = jax.block_until_ready(policy_forward(x_bf16, fused_bf16))
    np.testing.assert_allclose(np.asarray(logits_b), np.asarray(r_logits), rtol=5e-2, atol=5e-2)
    np.testing.assert_allclose(np.asarray(log_probs_b), np.asarray(r_log_probs), rtol=5e-2, atol=5e-2)
    np.testing.assert_allclose(np.asarray(value_b), np.asarray(r_value), rtol=5e-2, atol=5e-2)

    print("KERNEL_OK")
</pallas_src>

<mosaic_0001>
module attributes {stable_mosaic.version = 11 : i64} {
  func.func @policy_kernel(%arg0: i32, %arg1: memref<16x1024xf32, #tpu.memory_space<vmem>>, %arg2: memref<1024x128xf32, #tpu.memory_space<vmem>>, %arg3: memref<1x128xf32, #tpu.memory_space<vmem>>, %arg4: memref<128x256xf32, #tpu.memory_space<vmem>>, %arg5: memref<1x256xf32, #tpu.memory_space<vmem>>, %arg6: memref<128x128xf32, #tpu.memory_space<vmem>>, %arg7: memref<1x128xf32, #tpu.memory_space<vmem>>, %arg8: memref<128x112xf32, #tpu.memory_space<vmem>>, %arg9: memref<1x112xf32, #tpu.memory_space<vmem>>, %arg10: memref<16x128xf32, #tpu.memory_space<vmem>>) attributes {dimension_semantics = [#tpu.dimension_semantics<parallel>], iteration_bounds = array<i64: 1>, scalar_prefetch = 0 : i64, scratch_operands = 0 : i64, tpu.core_type = #tpu.core_type<tc>, window_params = [{transform_indices = @transform_0, window_bounds = array<i64: 16, 1024>}, {pipeline_mode = #tpu.pipeline_mode<synchronous>, transform_indices = @transform_1, window_bounds = array<i64: 1024, 128>}, {pipeline_mode = #tpu.pipeline_mode<synchronous>, transform_indices = @transform_2, window_bounds = array<i64: 1, 128>}, {pipeline_mode = #tpu.pipeline_mode<synchronous>, transform_indices = @transform_3, window_bounds = array<i64: 128, 256>}, {pipeline_mode = #tpu.pipeline_mode<synchronous>, transform_indices = @transform_4, window_bounds = array<i64: 1, 256>}, {pipeline_mode = #tpu.pipeline_mode<synchronous>, transform_indices = @transform_5, window_bounds = array<i64: 128, 128>}, {pipeline_mode = #tpu.pipeline_mode<synchronous>, transform_indices = @transform_6, window_bounds = array<i64: 1, 128>}, {pipeline_mode = #tpu.pipeline_mode<synchronous>, transform_indices = @transform_7, window_bounds = array<i64: 128, 112>}, {pipeline_mode = #tpu.pipeline_mode<synchronous>, transform_indices = @transform_8, window_bounds = array<i64: 1, 112>}, {transform_indices = @transform_9, window_bounds = array<i64: 16, 128>}]} {
    %c0 = arith.constant 0 : index
    %c0_0 = arith.constant 0 : index
    %0 = vector.load %arg1[%c0, %c0_0] : memref<16x1024xf32, #tpu.memory_space<vmem>>, vector<16x1024xf32>
    %c0_1 = arith.constant 0 : index
    %c0_2 = arith.constant 0 : index
    %1 = vector.load %arg2[%c0_1, %c0_2] : memref<1024x128xf32, #tpu.memory_space<vmem>>, vector<1024x128xf32>
    %cst = arith.constant dense<0.000000e+00> : vector<16x128xf32>
    %2 = tpu.matmul %0, %1, %cst {dimension_numbers = #tpu.dot_dimension_numbers<[1], [0], [0], [1], [0, 0, 1, 1], [], []>} : vector<16x1024xf32>, vector<1024x128xf32>, vector<16x128xf32> -> vector<16x128xf32>
    %c0_3 = arith.constant 0 : index
    %c0_4 = arith.constant 0 : index
    %3 = vector.load %arg3[%c0_3, %c0_4] : memref<1x128xf32, #tpu.memory_space<vmem>>, vector<1x128xf32>
    %4 = vector.broadcast %3 : vector<1x128xf32> to vector<16x128xf32>
    %5 = arith.addf %2, %4 : vector<16x128xf32>
    %cst_5 = arith.constant 0.000000e+00 : f32
    %6 = vector.broadcast %cst_5 : f32 to vector<16x128xf32>
    %7 = arith.maximumf %5, %6 : vector<16x128xf32>
    %c0_6 = arith.constant 0 : index
    %c0_7 = arith.constant 0 : index
    %8 = vector.load %arg4[%c0_6, %c0_7] : memref<128x256xf32, #tpu.memory_space<vmem>>, vector<128x256xf32>
    %cst_8 = arith.constant dense<0.000000e+00> : vector<16x256xf32>
    %9 = tpu.matmul %7, %8, %cst_8 {dimension_numbers = #tpu.dot_dimension_numbers<[1], [0], [0], [1], [0, 0, 1, 1], [], []>} : vector<16x128xf32>, vector<128x256xf32>, vector<16x256xf32> -> vector<16x256xf32>
    %c0_9 = arith.constant 0 : index
    %c0_10 = arith.constant 0 : index
    %10 = vector.load %arg5[%c0_9, %c0_10] : memref<1x256xf32, #tpu.memory_space<vmem>>, vector<1x256xf32>
    %11 = vector.broadcast %10 : vector<1x256xf32> to vector<16x256xf32>
    %12 = arith.addf %9, %11 : vector<16x256xf32>
    %13 = vector.extract_strided_slice %12 {offsets = [0, 0], sizes = [16, 128], strides = [1, 1]} : vector<16x256xf32> to vector<16x128xf32>
    %cst_11 = arith.constant 0.000000e+00 : f32
    %14 = vector.broadcast %cst_11 : f32 to vector<16x128xf32>
    %15 = arith.maximumf %13, %14 : vector<16x128xf32>
    %16 = vector.extract_strided_slice %12 {offsets = [0, 128], sizes = [16, 8], strides = [1, 1]} : vector<16x256xf32> to vector<16x8xf32>
    %cst_12 = arith.constant dense<0xFF800000> : vector<16xf32>
    %17 = vector.multi_reduction <maximumf>, %16, %cst_12 [1] : vector<16x8xf32> to vector<16xf32>
    %18 = vector.shape_cast %17 : vector<16xf32> to vector<16x1xf32>
    %19 = vector.broadcast %18 : vector<16x1xf32> to vector<16x8xf32>
    %20 = arith.subf %16, %19 : vector<16x8xf32>
    %21 = math.exp %20 : vector<16x8xf32>
    %cst_13 = arith.constant dense<0.000000e+00> : vector<16xf32>
    %22 = vector.multi_reduction <add>, %21, %cst_13 [1] : vector<16x8xf32> to vector<16xf32>
    %23 = vector.shape_cast %22 : vector<16xf32> to vector<16x1xf32>
    %24 = math.log %23 : vector<16x1xf32>
    %25 = vector.broadcast %24 : vector<16x1xf32> to vector<16x8xf32>
    %26 = arith.subf %20, %25 : vector<16x8xf32>
    %c0_14 = arith.constant 0 : index
    %c0_15 = arith.constant 0 : index
    %27 = vector.load %arg6[%c0_14, %c0_15] : memref<128x128xf32, #tpu.memory_space<vmem>>, vector<128x128xf32>
    %cst_16 = arith.constant dense<0.000000e+00> : vector<16x128xf32>
    %28 = tpu.matmul %15, %27, %cst_16 {dimension_numbers = #tpu.dot_dimension_numbers<[1], [0], [0], [1], [0, 0, 1, 1], [], []>} : vector<16x128xf32>, vector<128x128xf32>, vector<16x128xf32> -> vector<16x128xf32>
    %c0_17 = arith.constant 0 : index
    %c0_18 = arith.constant 0 : index
    %29 = vector.load %arg7[%c0_17, %c0_18] : memref<1x128xf32, #tpu.memory_space<vmem>>, vector<1x128xf32>
    %30 = vector.broadcast %29 : vector<1x128xf32> to vector<16x128xf32>
    %31 = arith.addf %28, %30 : vector<16x128xf32>
    %cst_19 = arith.constant 0.000000e+00 : f32
    %32 = vector.broadcast %cst_19 : f32 to vector<16x128xf32>
    %33 = arith.maximumf %31, %32 : vector<16x128xf32>
    %c0_20 = arith.constant 0 : index
    %c0_21 = arith.constant 0 : index
    %34 = vector.load %arg8[%c0_20, %c0_21] : memref<128x112xf32, #tpu.memory_space<vmem>>, vector<128x112xf32>
    %cst_22 = arith.constant dense<0.000000e+00> : vector<16x112xf32>
    %35 = tpu.matmul %33, %34, %cst_22 {dimension_numbers = #tpu.dot_dimension_numbers<[1], [0], [0], [1], [0, 0, 1, 1], [], []>} : vector<16x128xf32>, vector<128x112xf32>, vector<16x112xf32> -> vector<16x112xf32>
    %c0_23 = arith.constant 0 : index
    %c0_24 = arith.constant 0 : index
    %36 = vector.load %arg9[%c0_23, %c0_24] : memref<1x112xf32, #tpu.memory_space<vmem>>, vector<1x112xf32>
    %37 = vector.broadcast %36 : vector<1x112xf32> to vector<16x112xf32>
    %38 = arith.addf %35, %37 : vector<16x112xf32>
    %39 = tpu.concatenate %16, %26, %38 in 1 : vector<16x8xf32>, vector<16x8xf32>, vector<16x112xf32> -> vector<16x128xf32>
    %c0_25 = arith.constant 0 : index
    %c0_26 = arith.constant 0 : index
    %40 = vector.load %arg10[%c0_25, %c0_26] : memref<16x128xf32, #tpu.memory_space<vmem>>, vector<16x128xf32>
    tpu.vector_store %arg10[%c0_25, %c0_26], %39 {strides = array<i32>} : memref<16x128xf32, #tpu.memory_space<vmem>>, vector<16x128xf32>,
    return
  }
  func.func @transform_0(%arg0: i32) -> (i32, i32) {
    %c0_i32 = arith.constant 0 : i32
    %c0_i32_0 = arith.constant 0 : i32
    return %arg0, %c0_i32 : i32, i32
  }
  func.func @transform_1(%arg0: i32) -> (i32, i32) {
    %c0_i32 = arith.constant 0 : i32
    %c0_i32_0 = arith.constant 0 : i32
    %c0_i32_1 = arith.constant 0 : i32
    return %c0_i32, %c0_i32_0 : i32, i32
  }
  func.func @transform_2(%arg0: i32) -> (i32, i32) {
    %c0_i32 = arith.constant 0 : i32
    %c0_i32_0 = arith.constant 0 : i32
    %c0_i32_1 = arith.constant 0 : i32
    return %c0_i32, %c0_i32_0 : i32, i32
  }
  func.func @transform_3(%arg0: i32) -> (i32, i32) {
    %c0_i32 = arith.constant 0 : i32
    %c0_i32_0 = arith.constant 0 : i32
    %c0_i32_1 = arith.constant 0 : i32
    return %c0_i32, %c0_i32_0 : i32, i32
  }
  func.func @transform_4(%arg0: i32) -> (i32, i32) {
    %c0_i32 = arith.constant 0 : i32
    %c0_i32_0 = arith.constant 0 : i32
    %c0_i32_1 = arith.constant 0 : i32
    return %c0_i32, %c0_i32_0 : i32, i32
  }
  func.func @transform_5(%arg0: i32) -> (i32, i32) {
    %c0_i32 = arith.constant 0 : i32
    %c0_i32_0 = arith.constant 0 : i32
    %c0_i32_1 = arith.constant 0 : i32
    return %c0_i32, %c0_i32_0 : i32, i32
  }
  func.func @transform_6(%arg0: i32) -> (i32, i32) {
    %c0_i32 = arith.constant 0 : i32
    %c0_i32_0 = arith.constant 0 : i32
    %c0_i32_1 = arith.constant 0 : i32
    return %c0_i32, %c0_i32_0 : i32, i32
  }
  func.func @transform_7(%arg0: i32) -> (i32, i32) {
    %c0_i32 = arith.constant 0 : i32
    %c0_i32_0 = arith.constant 0 : i32
    %c0_i32_1 = arith.constant 0 : i32
    return %c0_i32, %c0_i32_0 : i32, i32
  }
  func.func @transform_8(%arg0: i32) -> (i32, i32) {
    %c0_i32 = arith.constant 0 : i32
    %c0_i32_0 = arith.constant 0 : i32
    %c0_i32_1 = arith.constant 0 : i32
    return %c0_i32, %c0_i32_0 : i32, i32
  }
  func.func @transform_9(%arg0: i32) -> (i32, i32) {
    %c0_i32 = arith.constant 0 : i32
    %c0_i32_0 = arith.constant 0 : i32
    return %arg0, %c0_i32 : i32, i32
  }
}

</mosaic_0001>

<bundles_post_ra>
// kernel: tpu_custom_call.1
= control target key start
LH: loop header
LB: loop body
LE: loop exit
PB: predicated region body
PF: predicated region fallthrough
CT: control target
= control target key end

     0   :  { %14 = vsyncpa [#allocation3], 0  ;;  %s1056_s0 = inlined_call_operand.vmem [shape: f32[2,1024], index: 0, kind: input, shape index: {}]   ;;  %s1057_s1 = inlined_call_operand.hbm [shape: f32[1024,128], index: 1, kind: input, shape index: {}]   ;;  %s1058_s2 = inlined_call_operand.vmem [shape: f32[1,128], index: 2, kind: input, shape index: {}]   ;;  %s1059_s3 = inlined_call_operand.hbm [shape: f32[128,256], index: 3, kind: input, shape index: {}]   ;;  %s1060_s4 = inlined_call_operand.vmem [shape: f32[1,256], index: 4, kind: input, shape index: {}]   ;;  %s1061_s5 = inlined_call_operand.vmem [shape: f32[128,128], index: 5, kind: input, shape index: {}]   ;;  %s1062_s6 = inlined_call_operand.vmem [shape: f32[1,128], index: 6, kind: input, shape index: {}]   ;;  %s1063_s7 = inlined_call_operand.vmem [shape: f32[128,112], index: 7, kind: input, shape index: {}]   ;;  %s1064_s8 = inlined_call_operand.vmem [shape: f32[1,112], index: 8, kind: input, shape index: {}]   ;;  %s1065_s9 = inlined_call_operand.hbm [shape: f32[2,128], index: 9, kind: output, shape index: {}]  }
   0x1   :  { %15 = vsyncpa [#allocation6], 0 }
   0x2   :  { %16 = vsyncpa [#allocation4], 0  ;;  %s23_s11 = sshll.u32 %s1057_s1, 4  ;;  %s810_s12 = smov [#allocation2]   ;;  %s24_s11 = int_to_ptr.hbm [resolvable:$true] %s23_s11 }
   0x3   :  { %s25_s13 = sshll.u32 %s810_s12, 4  ;;  %s38_s16 = sshll.u32 %s1059_s3, 4  ;;  %s26_s13 = int_to_ptr.vmem [resolvable:$true] %s25_s13  ;;  %s39_s16 = int_to_ptr.hbm [resolvable:$true] %s38_s16 }
   0x4   :  { %s811_s17 = smov 128   ;;  %s812_s18 = smov 8  }
   0x5   :  { %31 = dma.hbm_to_vmem [thread:$0]  %s24_s11, 16384, %s26_s13, [#allocation3], %s811_s17, %s811_s17, %s812_s18  }
   0x6   :  { %s813_s19 = smov [#allocation5]   ;;  %s814_s21 = smov 256  }
   0x7   :  { %s40_s20 = sshll.u32 %s813_s19, 4  ;;  %s815_s22 = smov 16   ;;  %s41_s20 = int_to_ptr.vmem [resolvable:$true] %s40_s20 }
   0x8   :  { %46 = dma.hbm_to_vmem [thread:$0]  %s39_s16, 4096, %s41_s20, [#allocation6], %s814_s21, %s814_s21, %s815_s22  }
   0x9   :  { %804 = dma.done.wait [#allocation3], 16384  }
   0xa   :  { %805 = vsyncadd [#allocation3], 4294950912 }
   0xb   :  { %806 = dma.done.wait [#allocation6], 4096  }
   0xc   :  { %807 = vsyncadd [#allocation6], 4294963200  ;;  %v96_v0 = vld [vmem:[#allocation2 + $0x78] sm:$0xff]  ;;  %v95_v2 = vld [vmem:[#allocation2 + $0x70] sm:$0xff]  ;;  %vm556_vm0 = vcmask 64512   ;;  %vm687_vm1 = vcmask 130048  }
   0xd   :  { %v128_v1 = vld [vmem:[#allocation2 + $0x178] sm:$0xff]  ;;  %284 = vmatpush.msra.mxu0 %v96_v0  ;;  %v127_v4 = vld [vmem:[#allocation2 + $0x170] sm:$0xff]  ;;  %v94_v6 = vld [vmem:[#allocation2 + $0x68] sm:$0xff] }
   0xe   :  { %330 = vmatpush.msra.mxu2 %v128_v1  ;;  %v112_v3 = vld [vmem:[#allocation2 + $0xf8] sm:$0xff]  ;;  %v111_v7 = vld [vmem:[#allocation2 + $0xf0] sm:$0xff]  ;;  %v126_v8 = vld [vmem:[#allocation2 + $0x168] sm:$0xff] }
   0xf   :  { %v144_v5 = vld [vmem:[#allocation2 + $0x1f8] sm:$0xff]  ;;  %307 = vmatpush.msra.mxu1 %v112_v3  ;;  %285 = vmatpush.msra.mxu0 %v95_v2  ;;  %v143_v9 = vld [vmem:[#allocation2 + $0x1f0] sm:$0xff]  ;;  %v110_v10 = vld [vmem:[#allocation2 + $0xe8] sm:$0xff] }
  0x10   :  { %353 = vmatpush.msra.mxu3 %v144_v5  ;;  %331 = vmatpush.msra.mxu2 %v127_v4  ;;  %v93_v11 = vld [vmem:[#allocation2 + $0x60] sm:$0xff]  ;;  %v142_v13 = vld [vmem:[#allocation2 + $0x1e8] sm:$0xff]  ;;  %v92_v16 = vld [vmem:[#allocation2 + $0x58] sm:$0xff] }
  0x11   :  { %308 = vmatpush.msra.mxu1 %v111_v7  ;;  %v125_v12 = vld [vmem:[#allocation2 + $0x160] sm:$0xff]  ;;  %286 = vmatpush.msra.mxu0 %v94_v6  ;;  %v124_v17 = vld [vmem:[#allocation2 + $0x158] sm:$0xff]  ;;  %v91_v20 = vld [vmem:[#allocation2 + $0x50] sm:$0xff] }
  0x12   :  { %354 = vmatpush.msra.mxu3 %v143_v9  ;;  %332 = vmatpush.msra.mxu2 %v126_v8  ;;  %v109_v14 = vld [vmem:[#allocation2 + $0xe0] sm:$0xff]  ;;  %v108_v18 = vld [vmem:[#allocation2 + $0xd8] sm:$0xff]  ;;  %v123_v21 = vld [vmem:[#allocation2 + $0x150] sm:$0xff] }
  0x13   :  { %v141_v15 = vld [vmem:[#allocation2 + $0x1e0] sm:$0xff]  ;;  %309 = vmatpush.msra.mxu1 %v110_v10  ;;  %287 = vmatpush.msra.mxu0 %v93_v11  ;;  %v140_v19 = vld [vmem:[#allocation2 + $0x1d8] sm:$0xff]  ;;  %v107_v22 = vld [vmem:[#allocation2 + $0xd0] sm:$0xff] }
  0x14   :  { %355 = vmatpush.msra.mxu3 %v142_v13  ;;  %333 = vmatpush.msra.mxu2 %v125_v12  ;;  %v139_v23 = vld [vmem:[#allocation2 + $0x1d0] sm:$0xff]  ;;  %v90_v24 = vld [vmem:[#allocation2 + $0x48] sm:$0xff]  ;;  %v89_v28 = vld [vmem:[#allocation2 + $0x40] sm:$0xff] }
  0x15   :  { %310 = vmatpush.msra.mxu1 %v109_v14  ;;  %288 = vmatpush.msra.mxu0 %v92_v16  ;;  %v122_v25 = vld [vmem:[#allocation2 + $0x148] sm:$0xff]  ;;  %v121_v29 = vld [vmem:[#allocation2 + $0x140] sm:$0xff]  ;;  %v88_v32 = vld [vmem:[#allocation2 + $0x38] sm:$0xff] }
  0x16   :  { %356 = vmatpush.msra.mxu3 %v141_v15  ;;  %334 = vmatpush.msra.mxu2 %v124_v17  ;;  %v106_v26 = vld [vmem:[#allocation2 + $0xc8] sm:$0xff]  ;;  %v105_v30 = vld [vmem:[#allocation2 + $0xc0] sm:$0xff]  ;;  %v120_v33 = vld [vmem:[#allocation2 + $0x138] sm:$0xff] }
  0x17   :  { %311 = vmatpush.msra.mxu1 %v108_v18  ;;  %289 = vmatpush.msra.mxu0 %v91_v20  ;;  %v138_v27 = vld [vmem:[#allocation2 + $0x1c8] sm:$0xff]  ;;  %v137_v31 = vld [vmem:[#allocation2 + $0x1c0] sm:$0xff]  ;;  %v104_v34 = vld [vmem:[#allocation2 + $0xb8] sm:$0xff] }
  0x18   :  { %357 = vmatpush.msra.mxu3 %v140_v19  ;;  %335 = vmatpush.msra.mxu2 %v123_v21  ;;  %v136_v35 = vld [vmem:[#allocation2 + $0x1b8] sm:$0xff]  ;;  %v87_v36 = vld [vmem:[#allocation2 + $0x30] sm:$0xff]  ;;  %v86_v40 = vld [vmem:[#allocation2 + $0x28] sm:$0xff] }
  0x19   :  { %312 = vmatpush.msra.mxu1 %v107_v22  ;;  %290 = vmatpush.msra.mxu0 %v90_v24  ;;  %v119_v37 = vld [vmem:[#allocation2 + $0x130] sm:$0xff]  ;;  %v118_v41 = vld [vmem:[#allocation2 + $0x128] sm:$0xff]  ;;  %v85_v44 = vld [vmem:[#allocation2 + $0x20] sm:$0xff] }
  0x1a   :  { %358 = vmatpush.msra.mxu3 %v139_v23  ;;  %336 = vmatpush.msra.mxu2 %v122_v25  ;;  %v103_v38 = vld [vmem:[#allocation2 + $0xb0] sm:$0xff]  ;;  %v102_v42 = vld [vmem:[#allocation2 + $0xa8] sm:$0xff]  ;;  %v117_v45 = vld [vmem:[#allocation2 + $0x120] sm:$0xff] }
  0x1b   :  { %313 = vmatpush.msra.mxu1 %v106_v26  ;;  %291 = vmatpush.msra.mxu0 %v89_v28  ;;  %v135_v39 = vld [vmem:[#allocation2 + $0x1b0] sm:$0xff]  ;;  %v134_v43 = vld [vmem:[#allocation2 + $0x1a8] sm:$0xff]  ;;  %v101_v46 = vld [vmem:[#allocation2 + $0xa0] sm:$0xff] }
  0x1c   :  { %359 = vmatpush.msra.mxu3 %v138_v27  ;;  %337 = vmatpush.msra.mxu2 %v121_v29  ;;  %v133_v47 = vld [vmem:[#allocation2 + $0x1a0] sm:$0xff]  ;;  %v84_v48 = vld [vmem:[#allocation2 + $0x18] sm:$0xff]  ;;  %v83_v52 = vld [vmem:[#allocation2 + $0x10] sm:$0xff] }
  0x1d   :  { %314 = vmatpush.msra.mxu1 %v105_v30  ;;  %292 = vmatpush.msra.mxu0 %v88_v32  ;;  %v116_v49 = vld [vmem:[#allocation2 + $0x118] sm:$0xff]  ;;  %v115_v53 = vld [vmem:[#allocation2 + $0x110] sm:$0xff]  ;;  %v82_v56 = vld [vmem:[#allocation2 + $0x8] sm:$0xff] }
  0x1e   :  { %360 = vmatpush.msra.mxu3 %v137_v31  ;;  %338 = vmatpush.msra.mxu2 %v120_v33  ;;  %v100_v50 = vld [vmem:[#allocation2 + $0x98] sm:$0xff]  ;;  %v99_v54 = vld [vmem:[#allocation2 + $0x90] sm:$0xff]  ;;  %v114_v57 = vld [vmem:[#allocation2 + $0x108] sm:$0xff] }
  0x1f   :  { %315 = vmatpush.msra.mxu1 %v104_v34  ;;  %293 = vmatpush.msra.mxu0 %v87_v36  ;;  %v132_v51 = vld [vmem:[#allocation2 + $0x198] sm:$0xff]  ;;  %v131_v55 = vld [vmem:[#allocation2 + $0x190] sm:$0xff]  ;;  %v98_v58 = vld [vmem:[#allocation2 + $0x88] sm:$0xff] }
  0x20   :  { %361 = vmatpush.msra.mxu3 %v136_v35  ;;  %339 = vmatpush.msra.mxu2 %v119_v37  ;;  %v130_v59 = vld [vmem:[#allocation2 + $0x188] sm:$0xff]  ;;  %v81_v60 = vld [vmem:[#allocation2] sm:$0xff]  ;;  %v160_v62 = vld [vmem:[#allocation2 + $0x278] sm:$0xff] }
  0x21   :  { %316 = vmatpush.msra.mxu1 %v103_v38  ;;  %294 = vmatpush.msra.mxu0 %v86_v40  ;;  %v113_v61 = vld [vmem:[#allocation2 + $0x100] sm:$0xff]  ;;  %v192_v63 = vld [vmem:[#allocation2 + $0x378] sm:$0xff]  ;;  %v159_v2 = vld [vmem:[#allocation2 + $0x270] sm:$0xff] }
  0x22   :  { %362 = vmatpush.msra.mxu3 %v135_v39  ;;  %340 = vmatpush.msra.mxu2 %v118_v41  ;;  %v97_v0 = vld [vmem:[#allocation2 + $0x80] sm:$0xff]  ;;  %v176_v3 = vld [vmem:[#allocation2 + $0x2f8] sm:$0xff]  ;;  %v191_v4 = vld [vmem:[#allocation2 + $0x370] sm:$0xff] }
  0x23   :  { %317 = vmatpush.msra.mxu1 %v102_v42  ;;  %295 = vmatpush.msra.mxu0 %v85_v44  ;;  %v129_v1 = vld [vmem:[#allocation2 + $0x180] sm:$0xff]  ;;  %v65_v5 = vld [vmem:[%s1056_s0] sm:$0xff]  ;;  %v67_v6 = vld [vmem:[%s1056_s0 + $0x10] sm:$0xff] }
  0x24   :  { %363 = vmatpush.msra.mxu3 %v134_v43  ;;  %341 = vmatpush.msra.mxu2 %v117_v45  ;;  %v208_v7 = vld [vmem:[#allocation2 + $0x3f8] sm:$0xff]  ;;  %v71_v9 = vld [vmem:[%s1056_s0 + $0x30] sm:$0xff]  ;;  %229 = vst [vmem:[#allocation1] ss:$4 sm:$0xff] %v65_v5  ;;  %v175_v11 = vld [vmem:[#allocation2 + $0x2f0] sm:$0xff] }
  0x25   :  { %318 = vmatpush.msra.mxu1 %v101_v46  ;;  %296 = vmatpush.msra.mxu0 %v84_v48  ;;  %v69_v8 = vld [vmem:[%s1056_s0 + $0x20] sm:$0xff]  ;;  %v158_v10 = vld [vmem:[#allocation2 + $0x268] sm:$0xff]  ;;  %231 = vst [vmem:[#allocation1 + $0x1] ss:$4 sm:$0xff] %v67_v6  ;;  %v207_v13 = vld [vmem:[#allocation2 + $0x3f0] sm:$0xff] }
  0x26   :  { %364 = vmatpush.msra.mxu3 %v133_v47  ;;  %342 = vmatpush.msra.mxu2 %v116_v49  ;;  %v190_v12 = vld [vmem:[#allocation2 + $0x368] sm:$0xff]  ;;  %233 = vst [vmem:[#allocation1 + $0x2] ss:$4 sm:$0xff] %v69_v8  ;;  %v157_v14 = vld [vmem:[#allocation2 + $0x260] sm:$0xff]  ;;  %v156_v18 = vld [vmem:[#allocation2 + $0x258] sm:$0xff] }
  0x27   :  { %319 = vmatpush.msra.mxu1 %v100_v50  ;;  %297 = vmatpush.msra.mxu0 %v83_v52  ;;  %v174_v15 = vld [vmem:[#allocation2 + $0x2e8] sm:$0xff]  ;;  %235 = vst [vmem:[#allocation1 + $0x3] ss:$4 sm:$0xff] %v71_v9  ;;  %v189_v16 = vld [vmem:[#allocation2 + $0x360] sm:$0xff]  ;;  %v188_v20 = vld [vmem:[#allocation2 + $0x358] sm:$0xff] }
  0x28   :  { %365 = vmatpush.msra.mxu3 %v132_v51  ;;  %343 = vmatpush.msra.mxu2 %v115_v53  ;;  %v206_v17 = vld [vmem:[#allocation2 + $0x3e8] sm:$0xff]  ;;  %v173_v19 = vld [vmem:[#allocation2 + $0x2e0] sm:$0xff]  ;;  %v155_v22 = vld [vmem:[#allocation2 + $0x250] sm:$0xff] }
  0x29   :  { %320 = vmatpush.msra.mxu1 %v99_v54  ;;  %298 = vmatpush.msra.mxu0 %v82_v56  ;;  %v205_v21 = vld [vmem:[#allocation2 + $0x3e0] sm:$0xff]  ;;  %v172_v23 = vld [vmem:[#allocation2 + $0x2d8] sm:$0xff]  ;;  %v187_v24 = vld [vmem:[#allocation2 + $0x350] sm:$0xff] }
  0x2a   :  { %366 = vmatpush.msra.mxu3 %v131_v55  ;;  %344 = vmatpush.msra.mxu2 %v114_v57  ;;  %v204_v25 = vld [vmem:[#allocation2 + $0x3d8] sm:$0xff]  ;;  %v154_v26 = vld [vmem:[#allocation2 + $0x248] sm:$0xff]  ;;  %v171_v27 = vld [vmem:[#allocation2 + $0x2d0] sm:$0xff] }
  0x2b   :  { %321 = vmatpush.msra.mxu1 %v98_v58  ;;  %299 = vmatpush.msra.mxu0 %v81_v60  ;;  %v186_v28 = vld [vmem:[#allocation2 + $0x348] sm:$0xff]  ;;  %v203_v29 = vld [vmem:[#allocation2 + $0x3d0] sm:$0xff]  ;;  %v153_v30 = vld [vmem:[#allocation2 + $0x240] sm:$0xff] }
  0x2c   :  { %367 = vmatpush.msra.mxu3 %v130_v59  ;;  %345 = vmatpush.msra.mxu2 %v113_v61  ;;  %v170_v31 = vld [vmem:[#allocation2 + $0x2c8] sm:$0xff]  ;;  %v73_v32 = vld [vmem:[%s1056_s0 + $0x40] sm:$0xff]  ;;  %v185_v39 = vld [vmem:[#allocation2 + $0x340] sm:$0xff] }
  0x2d   :  { %376 = vmatpush.msrb.mxu0 %v160_v62  ;;  %322 = vmatpush.msra.mxu1 %v97_v0  ;;  %v75_v33 = vld [vmem:[%s1056_s0 + $0x50] sm:$0xff]  ;;  %v77_v34 = vld [vmem:[%s1056_s0 + $0x60] sm:$0xff]  ;;  %v169_v43 = vld [vmem:[#allocation2 + $0x2c0] sm:$0xff] }
  0x2e   :  { %422 = vmatpush.msrb.mxu2 %v192_v63  ;;  %368 = vmatpush.msra.mxu3 %v129_v1  ;;  %v244_v35 = vld.sshfl [vmem:[#allocation1] sm:$0xff pattern:$0x73625140]  ;;  %v246_v36 = vld.sshfl [vmem:[#allocation1 + $0x10] sm:$0xff pattern:$0x73625140] }
  0x2f   :  { %377 = vmatpush.msrb.mxu0 %v159_v2  ;;  %399 = vmatpush.msrb.mxu1 %v176_v3  ;;  %v245_v37 = vld.sshfl [vmem:[#allocation1 + $0x8] sm:$0xff pattern:$0x73625140]  ;;  %v247_v38 = vld.sshfl [vmem:[#allocation1 + $0x18] sm:$0xff pattern:$0x73625140] }
  0x30   :  { %423 = vmatpush.msrb.mxu2 %v191_v4  ;;  %445 = vmatpush.msrb.mxu3 %v208_v7  ;;  %v202_v40 = vld [vmem:[#allocation2 + $0x3c8] sm:$0xff]  ;;  %252 = vst [vmem:[#allocation1] ss:$4 sm:$0xff] %v73_v32  ;;  %v152_v42 = vld [vmem:[#allocation2 + $0x238] sm:$0xff]  ;;  %v66_v45 = vld [vmem:[%s1056_s0 + $0x8] sm:$0xff] }
  0x31   :  { %378 = vmatpush.msrb.mxu0 %v158_v10  ;;  %400 = vmatpush.msrb.mxu1 %v175_v11  ;;  %v79_v41 = vld [vmem:[%s1056_s0 + $0x70] sm:$0xff]  ;;  %253 = vst [vmem:[#allocation1 + $0x1] ss:$4 sm:$0xff] %v75_v33  ;;  %v184_v44 = vld [vmem:[#allocation2 + $0x338] sm:$0xff]  ;;  %v201_v46 = vld [vmem:[#allocation2 + $0x3c0] sm:$0xff] }
  0x32   :  { %424 = vmatpush.msrb.mxu2 %v190_v12  ;;  %446 = vmatpush.msrb.mxu3 %v207_v13  ;;  %254 = vst [vmem:[#allocation1 + $0x2] ss:$4 sm:$0xff] %v77_v34  ;;  %v68_v47 = vld [vmem:[%s1056_s0 + $0x18] sm:$0xff]  ;;  %v70_v48 = vld [vmem:[%s1056_s0 + $0x28] sm:$0xff]  ;;  %v168_v51 = vld [vmem:[#allocation2 + $0x2b8] sm:$0xff] }
  0x33   :  { %379 = vmatpush.msrb.mxu0 %v157_v14  ;;  %401 = vmatpush.msrb.mxu1 %v174_v15  ;;  %255 = vst [vmem:[#allocation1 + $0x3] ss:$4 sm:$0xff] %v79_v41  ;;  %v72_v49 = vld [vmem:[%s1056_s0 + $0x38] sm:$0xff]  ;;  %v200_v53 = vld [vmem:[#allocation2 + $0x3b8] sm:$0xff]  ;;  %v150_v54 = vld [vmem:[#allocation2 + $0x228] sm:$0xff] }
  0x34   :  { %425 = vmatpush.msrb.mxu2 %v189_v16  ;;  %447 = vmatpush.msrb.mxu3 %v206_v17  ;;  %237 = vst [vmem:[#allocation1 + $0x20] ss:$4 sm:$0xff] %v66_v45  ;;  %v151_v50 = vld [vmem:[#allocation2 + $0x230] sm:$0xff]  ;;  %v182_v56 = vld [vmem:[#allocation2 + $0x328] sm:$0xff]  ;;  %v149_v58 = vld [vmem:[#allocation2 + $0x220] sm:$0xff] }
  0x35   :  { %380 = vmatpush.msrb.mxu0 %v156_v18  ;;  %402 = vmatpush.msrb.mxu1 %v173_v19  ;;  %239 = vst [vmem:[#allocation1 + $0x21] ss:$4 sm:$0xff] %v68_v47  ;;  %v183_v52 = vld [vmem:[#allocation2 + $0x330] sm:$0xff]  ;;  %v166_v59 = vld [vmem:[#allocation2 + $0x2a8] sm:$0xff]  ;;  %v181_v60 = vld [vmem:[#allocation2 + $0x320] sm:$0xff] }
  0x36   :  { %426 = vmatpush.msrb.mxu2 %v188_v20  ;;  %448 = vmatpush.msrb.mxu3 %v205_v21  ;;  %241 = vst [vmem:[#allocation1 + $0x22] ss:$4 sm:$0xff] %v70_v48  ;;  %v167_v55 = vld [vmem:[#allocation2 + $0x2b0] sm:$0xff]  ;;  %v198_v61 = vld [vmem:[#allocation2 + $0x3a8] sm:$0xff]  ;;  %v148_v62 = vld [vmem:[#allocation2 + $0x218] sm:$0xff] }
  0x37   :  { %381 = vmatpush.msrb.mxu0 %v155_v22  ;;  %403 = vmatpush.msrb.mxu1 %v172_v23  ;;  %243 = vst [vmem:[#allocation1 + $0x23] ss:$4 sm:$0xff] %v72_v49  ;;  %v199_v57 = vld [vmem:[#allocation2 + $0x3b0] sm:$0xff]  ;;  %v165_v63 = vld [vmem:[#allocation2 + $0x2a0] sm:$0xff]  ;;  %v180_v2 = vld [vmem:[#allocation2 + $0x318] sm:$0xff] }
  0x38   :  { %427 = vmatpush.msrb.mxu2 %v187_v24  ;;  %449 = vmatpush.msrb.mxu3 %v204_v25  ;;  %v197_v3 = vld [vmem:[#allocation2 + $0x3a0] sm:$0xff]  ;;  %v76_v5 = vld [vmem:[%s1056_s0 + $0x58] sm:$0xff]  ;;  %v164_v9 = vld [vmem:[#allocation2 + $0x298] sm:$0xff] }
  0x39   :  { %382 = vmatpush.msrb.mxu0 %v154_v26  ;;  %404 = vmatpush.msrb.mxu1 %v171_v27  ;;  %v74_v4 = vld [vmem:[%s1056_s0 + $0x48] sm:$0xff]  ;;  %v147_v8 = vld [vmem:[#allocation2 + $0x210] sm:$0xff]  ;;  %v196_v16 = vld [vmem:[#allocation2 + $0x398] sm:$0xff] }
  0x3a   :  { %428 = vmatpush.msrb.mxu2 %v186_v28  ;;  %450 = vmatpush.msrb.mxu3 %v203_v29  ;;  %v260_v0 = vld.sshfl [vmem:[#allocation1] sm:$0xff pattern:$0x73625140]  ;;  %v262_v1 = vld.sshfl [vmem:[#allocation1 + $0x10] sm:$0xff pattern:$0x73625140] }
  0x3b   :  { %383 = vmatpush.msrb.mxu0 %v153_v30  ;;  %405 = vmatpush.msrb.mxu1 %v170_v31  ;;  %v261_v6 = vld.sshfl [vmem:[#allocation1 + $0x8] sm:$0xff pattern:$0x73625140]  ;;  %v263_v7 = vld.sshfl [vmem:[#allocation1 + $0x18] sm:$0xff pattern:$0x73625140] }
  0x3c   :  { %429 = vmatpush.msrb.mxu2 %v185_v39  ;;  %451 = vmatpush.msrb.mxu3 %v202_v40  ;;  %v78_v10 = vld [vmem:[%s1056_s0 + $0x68] sm:$0xff]  ;;  %v179_v15 = vld [vmem:[#allocation2 + $0x310] sm:$0xff]  ;;  %v146_v18 = vld [vmem:[#allocation2 + $0x208] sm:$0xff] }
  0x3d   :  { %300 = vmatmul.f32.vlgmr.msra.gmra.mxu0 %v244_v35  ;;  %346 = vmatmul.f32.vlgmr.msra.gmra.mxu2 %v246_v36  ;;  %v80_v17 = vld [vmem:[%s1056_s0 + $0x78] sm:$0xff]  ;;  %v178_v20 = vld [vmem:[#allocation2 + $0x308] sm:$0xff]  ;;  %v145_v22 = vld [vmem:[#allocation2 + $0x200] sm:$0xff] }
  0x3e   :  { %384 = vmatpush.msrb.mxu0 %v152_v42  ;;  %406 = vmatpush.msrb.mxu1 %v169_v43  ;;  %v248_v11 = vld.sshfl [vmem:[#allocation1 + $0x20] sm:$0xff pattern:$0x73625140]  ;;  %v250_v12 = vld.sshfl [vmem:[#allocation1 + $0x30] sm:$0xff pattern:$0x73625140] }
  0x3f   :  { %430 = vmatpush.msrb.mxu2 %v184_v44  ;;  %452 = vmatpush.msrb.mxu3 %v201_v46  ;;  %v249_v13 = vld.sshfl [vmem:[#allocation1 + $0x28] sm:$0xff pattern:$0x73625140]  ;;  %v251_v14 = vld.sshfl [vmem:[#allocation1 + $0x38] sm:$0xff pattern:$0x73625140] }
  0x40   :  { %323 = vmatmul.f32.vlgmr.msra.gmra.mxu1 %v245_v37  ;;  %369 = vmatmul.f32.vlgmr.msra.gmra.mxu3 %v247_v38  ;;  %256 = vst [vmem:[#allocation1 + $0x20] ss:$4 sm:$0xff] %v74_v4  ;;  %v163_v19 = vld [vmem:[#allocation2 + $0x290] sm:$0xff]  ;;  %v162_v23 = vld [vmem:[#allocation2 + $0x288] sm:$0xff]  ;;  %v177_v24 = vld [vmem:[#allocation2 + $0x300] sm:$0xff] }
  0x41   :  { %385 = vmatpush.msrb.mxu0 %v151_v50  ;;  %407 = vmatpush.msrb.mxu1 %v168_v51  ;;  %257 = vst [vmem:[#allocation1 + $0x21] ss:$4 sm:$0xff] %v76_v5  ;;  %v195_v21 = vld [vmem:[#allocation2 + $0x390] sm:$0xff]  ;;  %v194_v25 = vld [vmem:[#allocation2 + $0x388] sm:$0xff]  ;;  %v161_v26 = vld [vmem:[#allocation2 + $0x280] sm:$0xff] }
  0x42   :  { %431 = vmatpush.msrb.mxu2 %v183_v52  ;;  %453 = vmatpush.msrb.mxu3 %v200_v53  ;;  %258 = vst [vmem:[#allocation1 + $0x22] ss:$4 sm:$0xff] %v78_v10  ;;  %v193_v27 = vld [vmem:[#allocation2 + $0x380] sm:$0xff]  ;;  %v500_v28 = vld [vmem:[#allocation5 + $0xf0] sm:$0xff]  ;;  %v501_v29 = vld [vmem:[#allocation5 + $0xf8] sm:$0xff] }
  0x43   :  { %386 = vmatpush.msrb.mxu0 %v150_v54  ;;  %408 = vmatpush.msrb.mxu1 %v167_v55  ;;  %259 = vst [vmem:[#allocation1 + $0x23] ss:$4 sm:$0xff] %v80_v17  ;;  %v498_v34 = vld [vmem:[#allocation5 + $0xe0] sm:$0xff]  ;;  %v499_v35 = vld [vmem:[#allocation5 + $0xe8] sm:$0xff]  ;;  %v496_v36 = vld [vmem:[#allocation5 + $0xd0] sm:$0xff] }
  0x44   :  { %432 = vmatpush.msrb.mxu2 %v182_v56  ;;  %454 = vmatpush.msrb.mxu3 %v199_v57  ;;  %v497_v37 = vld [vmem:[#allocation5 + $0xd8] sm:$0xff]  ;;  %v494_v38 = vld [vmem:[#allocation5 + $0xc0] sm:$0xff]  ;;  %v495_v39 = vld [vmem:[#allocation5 + $0xc8] sm:$0xff] }
  0x45   :  { %387 = vmatpush.msrb.mxu0 %v149_v58  ;;  %409 = vmatpush.msrb.mxu1 %v166_v59  ;;  %v492_v40 = vld [vmem:[#allocation5 + $0xb0] sm:$0xff]  ;;  %v493_v41 = vld [vmem:[#allocation5 + $0xb8] sm:$0xff]  ;;  %v490_v42 = vld [vmem:[#allocation5 + $0xa0] sm:$0xff] }
  0x46   :  { %433 = vmatpush.msrb.mxu2 %v181_v60  ;;  %455 = vmatpush.msrb.mxu3 %v198_v61  ;;  %v491_v43 = vld [vmem:[#allocation5 + $0xa8] sm:$0xff]  ;;  %v488_v44 = vld [vmem:[#allocation5 + $0x90] sm:$0xff]  ;;  %v489_v45 = vld [vmem:[#allocation5 + $0x98] sm:$0xff] }
  0x47   :  { %303 = vmatmul.f32.gmra.mxu0 %v260_v0  ;;  %349 = vmatmul.f32.gmra.mxu2 %v262_v1  ;;  %v486_v46 = vld [vmem:[#allocation5 + $0x80] sm:$0xff]  ;;  %v487_v47 = vld [vmem:[#allocation5 + $0x88] sm:$0xff]  ;;  %v484_v48 = vld [vmem:[#allocation5 + $0x70] sm:$0xff] }
  0x48   :  { %388 = vmatpush.msrb.mxu0 %v148_v62  ;;  %410 = vmatpush.msrb.mxu1 %v165_v63  ;;  %v485_v49 = vld [vmem:[#allocation5 + $0x78] sm:$0xff]  ;;  %v482_v50 = vld [vmem:[#allocation5 + $0x60] sm:$0xff]  ;;  %v483_v51 = vld [vmem:[#allocation5 + $0x68] sm:$0xff] }
  0x49   :  { %434 = vmatpush.msrb.mxu2 %v180_v2  ;;  %456 = vmatpush.msrb.mxu3 %v197_v3  ;;  %v480_v52 = vld [vmem:[#allocation5 + $0x50] sm:$0xff]  ;;  %v481_v53 = vld [vmem:[#allocation5 + $0x58] sm:$0xff]  ;;  %v478_v54 = vld [vmem:[#allocation5 + $0x40] sm:$0xff] }
  0x4a   :  { %326 = vmatmul.f32.gmra.mxu1 %v261_v6  ;;  %372 = vmatmul.f32.gmra.mxu3 %v263_v7  ;;  %v264_v30 = vld.sshfl [vmem:[#allocation1 + $0x20] sm:$0xff pattern:$0x73625140]  ;;  %v266_v31 = vld.sshfl [vmem:[#allocation1 + $0x30] sm:$0xff pattern:$0x73625140] }
  0x4b   :  { %389 = vmatpush.msrb.mxu0 %v147_v8  ;;  %411 = vmatpush.msrb.mxu1 %v164_v9  ;;  %v265_v32 = vld.sshfl [vmem:[#allocation1 + $0x28] sm:$0xff pattern:$0x73625140]  ;;  %v267_v33 = vld.sshfl [vmem:[#allocation1 + $0x38] sm:$0xff pattern:$0x73625140] }
  0x4c   :  { %435 = vmatpush.msrb.mxu2 %v179_v15  ;;  %457 = vmatpush.msrb.mxu3 %v196_v16  ;;  %v479_v55 = vld [vmem:[#allocation5 + $0x48] sm:$0xff]  ;;  %v476_v56 = vld [vmem:[#allocation5 + $0x30] sm:$0xff]  ;;  %v477_v57 = vld [vmem:[#allocation5 + $0x38] sm:$0xff] }
  0x4d   :  { %390 = vmatpush.msrb.mxu0 %v146_v18  ;;  %412 = vmatpush.msrb.mxu1 %v163_v19  ;;  %v474_v58 = vld [vmem:[#allocation5 + $0x20] sm:$0xff]  ;;  %v475_v59 = vld [vmem:[#allocation5 + $0x28] sm:$0xff]  ;;  %v472_v60 = vld [vmem:[#allocation5 + $0x10] sm:$0xff] }
  0x4e   :  { %436 = vmatpush.msrb.mxu2 %v178_v20  ;;  %458 = vmatpush.msrb.mxu3 %v195_v21  ;;  %v473_v61 = vld [vmem:[#allocation5 + $0x18] sm:$0xff]  ;;  %v470_v62 = vld [vmem:[#allocation5] sm:$0xff]  ;;  %v471_v63 = vld [vmem:[#allocation5 + $0x8] sm:$0xff] }
  0x4f   :  { %391 = vmatpush.msrb.mxu0 %v145_v22  ;;  %413 = vmatpush.msrb.mxu1 %v162_v23  ;;  %v721_v1 = vld [vmem:[%s1058_s2] ss:$0 sm:$0xff]  ;;  %v596_v6 = vld [vmem:[%s1061_s5 + $0x78] sm:$0xff]  ;;  %v595_v7 = vld [vmem:[%s1061_s5 + $0x70] sm:$0xff] }
  0x50   :  { %437 = vmatpush.msrb.mxu2 %v177_v24  ;;  %459 = vmatpush.msrb.mxu3 %v194_v25  ;;  %v594_v10 = vld [vmem:[%s1061_s5 + $0x68] sm:$0xff]  ;;  %v592_v15 = vld [vmem:[%s1061_s5 + $0x58] sm:$0xff]  ;;  %v591_v17 = vld [vmem:[%s1061_s5 + $0x50] sm:$0xff] }
  0x51   :  { %392 = vmatmul.f32.vlgmr.msrb.gmra.mxu0 %v248_v11  ;;  %438 = vmatmul.f32.vlgmr.msrb.gmra.mxu2 %v250_v12  ;;  %v593_v12 = vld [vmem:[%s1061_s5 + $0x60] sm:$0xff]  ;;  %v590_v21 = vld [vmem:[%s1061_s5 + $0x48] sm:$0xff] }
  0x52   :  { %414 = vmatpush.msrb.mxu1 %v161_v26  ;;  %460 = vmatpush.msrb.mxu3 %v193_v27  ;;  %v589_v24 = vld [vmem:[%s1061_s5 + $0x40] sm:$0xff]  ;;  %v588_v27 = vld [vmem:[%s1061_s5 + $0x38] sm:$0xff] }
  0x53   :  { %415 = vmatmul.f32.vlgmr.msrb.gmra.mxu1 %v249_v13  ;;  %461 = vmatmul.f32.vlgmr.msrb.gmra.mxu3 %v251_v14 }
  0x54   :  { %508 = vmatpush.msra.mxu0 %v500_v28  ;;  %531 = vmatpush.msra.mxu1 %v501_v29  ;;  %v587_v29 = vld [vmem:[%s1061_s5 + $0x30] sm:$0xff] }
  0x55   :  { %601 = vmatpush.msra.mxu2 %v596_v6 }
  0x56   :  { %509 = vmatpush.msra.mxu0 %v498_v34  ;;  %532 = vmatpush.msra.mxu1 %v499_v35 }
  0x57   :  { %602 = vmatpush.msra.mxu2 %v595_v7  ;;  %v636_v7 = vld [vmem:[%s1063_s7 + $0x50] sm:$0xff] }
  0x58   :  { %510 = vmatpush.msra.mxu0 %v496_v36  ;;  %533 = vmatpush.msra.mxu1 %v497_v37 }
  0x59   :  { %395 = vmatmul.f32.gmra.mxu0 %v264_v30  ;;  %441 = vmatmul.f32.gmra.mxu2 %v266_v31 }
  0x5a   :  { %511 = vmatpush.msra.mxu0 %v494_v38  ;;  %534 = vmatpush.msra.mxu1 %v495_v39  ;;  %v585_v38 = vld [vmem:[%s1061_s5 + $0x20] sm:$0xff] }
  0x5b   :  { %418 = vmatmul.f32.gmra.mxu1 %v265_v32  ;;  %464 = vmatmul.f32.gmra.mxu3 %v267_v33  ;;  %v586_v33 = vld [vmem:[%s1061_s5 + $0x28] sm:$0xff] }
  0x5c   :  { %512 = vmatpush.msra.mxu0 %v492_v40  ;;  %535 = vmatpush.msra.mxu1 %v493_v41  ;;  %v584_v41 = vld [vmem:[%s1061_s5 + $0x18] sm:$0xff] }
  0x5d   :  { %603 = vmatpush.msra.mxu2 %v594_v10  ;;  %v633_v10 = vld [vmem:[%s1063_s7 + $0x38] sm:$0xff] }
  0x5e   :  { %513 = vmatpush.msra.mxu0 %v490_v42  ;;  %536 = vmatpush.msra.mxu1 %v491_v43 }
  0x5f   :  { %604 = vmatpush.msra.mxu2 %v593_v12  ;;  %v631_v12 = vld [vmem:[%s1063_s7 + $0x28] sm:$0xff] }
  0x60   :  { %514 = vmatpush.msra.mxu0 %v488_v44  ;;  %537 = vmatpush.msra.mxu1 %v489_v45 }
  0x61   :  { %605 = vmatpush.msra.mxu2 %v592_v15  ;;  %v628_v15 = vld [vmem:[%s1063_s7 + $0x10] sm:$0xff] }
  0x62   :  { %515 = vmatpush.msra.mxu0 %v486_v46  ;;  %538 = vmatpush.msra.mxu1 %v487_v47 }
  0x63   :  { %606 = vmatpush.msra.mxu2 %v591_v17  ;;  %v626_v17 = vld [vmem:[%s1063_s7] sm:$0xff] }
  0x64   :  { %516 = vmatpush.msra.mxu0 %v484_v48  ;;  %539 = vmatpush.msra.mxu1 %v485_v49  ;;  %v583_v48 = vld [vmem:[%s1061_s5 + $0x10] sm:$0xff]  ;;  %v582_v49 = vld [vmem:[%s1061_s5 + $0x8] sm:$0xff] }
  0x65   :  { %607 = vmatpush.msra.mxu2 %v590_v21 }
  0x66   :  { %517 = vmatpush.msra.mxu0 %v482_v50  ;;  %540 = vmatpush.msra.mxu1 %v483_v51  ;;  %v581_v50 = vld [vmem:[%s1061_s5] sm:$0xff]  ;;  %v641_v51 = vld [vmem:[%s1063_s7 + $0x78] sm:$0xff] }
  0x67   :  { %608 = vmatpush.msra.mxu2 %v589_v24  ;;  %646 = vmatpush.msra.mxu3 %v641_v51 }
  0x68   :  { %518 = vmatpush.msra.mxu0 %v480_v52  ;;  %541 = vmatpush.msra.mxu1 %v481_v53  ;;  %v640_v52 = vld [vmem:[%s1063_s7 + $0x70] sm:$0xff]  ;;  %v639_v53 = vld [vmem:[%s1063_s7 + $0x68] sm:$0xff] }
  0x69   :  { %609 = vmatpush.msra.mxu2 %v588_v27  ;;  %647 = vmatpush.msra.mxu3 %v640_v52 }
  0x6a   :  { %519 = vmatpush.msra.mxu0 %v478_v54  ;;  %542 = vmatpush.msra.mxu1 %v479_v55  ;;  %v638_v54 = vld [vmem:[%s1063_s7 + $0x60] sm:$0xff]  ;;  %v637_v55 = vld [vmem:[%s1063_s7 + $0x58] sm:$0xff] }
  0x6b   :  { %610 = vmatpush.msra.mxu2 %v587_v29  ;;  %648 = vmatpush.msra.mxu3 %v639_v53 }
  0x6c   :  { %520 = vmatpush.msra.mxu0 %v476_v56  ;;  %543 = vmatpush.msra.mxu1 %v477_v57  ;;  %v502_v56 = vld [vmem:[%s1060_s4] sm:$0x3] }
  0x6d   :  { %611 = vmatpush.msra.mxu2 %v586_v33  ;;  %649 = vmatpush.msra.mxu3 %v638_v54  ;;  %v504_v57 = vperm.slane %v502_v56, 0 }
  0x6e   :  { %521 = vmatpush.msra.mxu0 %v474_v58  ;;  %544 = vmatpush.msra.mxu1 %v475_v59  ;;  %v505_v58 = vperm.slane %v502_v56, 1 }
  0x6f   :  { %612 = vmatpush.msra.mxu2 %v585_v38  ;;  %650 = vmatpush.msra.mxu3 %v637_v55 }
  0x70   :  { %522 = vmatpush.msra.mxu0 %v472_v60  ;;  %545 = vmatpush.msra.mxu1 %v473_v61 }
  0x71   :  { %613 = vmatpush.msra.mxu2 %v584_v41  ;;  %651 = vmatpush.msra.mxu3 %v636_v7 }
  0x72   :  { %523 = vmatpush.msra.mxu0 %v470_v62  ;;  %546 = vmatpush.msra.mxu1 %v471_v63 }
  0x73   :  { %614 = vmatpush.msra.mxu2 %v583_v48 }
  0x75   :  { %615 = vmatpush.msra.mxu2 %v582_v49 }
  0x77   :  { %616 = vmatpush.msra.mxu2 %v581_v50 }
  0xba   :  { %v301_v0 = vpop.f32.mrf.mxu0 }
  0xbb   :  { %v302_v4 = vadd.f32 %v721_v1, %v301_v0 }
  0xbd   :  { %v324_v2 = vpop.f32.mrf.mxu1 }
  0xbe   :  { %v325_v9 = vadd.f32 %v324_v2, %v302_v4 }
  0xc0   :  { %v347_v3 = vpop.f32.mrf.mxu2 }
  0xc1   :  { %v348_v13 = vadd.f32 %v347_v3, %v325_v9  ;;  %v634_v9 = vld [vmem:[%s1063_s7 + $0x40] sm:$0xff] }
  0xc3   :  { %v370_v5 = vpop.f32.mrf.mxu3 }
  0xc4   :  { %v304_v8 = vpop.f32.mrf.mxu0  ;;  %v371_v18 = vadd.f32 %v370_v5, %v348_v13  ;;  %v630_v13 = vld [vmem:[%s1063_s7 + $0x20] sm:$0xff] }
  0xc5   :  { %v305_v14 = vadd.f32 %v721_v1, %v304_v8  ;;  %v635_v8 = vld [vmem:[%s1063_s7 + $0x48] sm:$0xff] }
  0xc6   :  { %652 = vmatpush.msra.mxu3 %v635_v8 }
  0xc7   :  { %v327_v11 = vpop.f32.mrf.mxu1 }
  0xc8   :  { %v328_v19 = vadd.f32 %v327_v11, %v305_v14  ;;  %653 = vmatpush.msra.mxu3 %v634_v9  ;;  %v632_v11 = vld [vmem:[%s1063_s7 + $0x30] sm:$0xff]  ;;  %v629_v14 = vld [vmem:[%s1063_s7 + $0x18] sm:$0xff] }
  0xca   :  { %v350_v16 = vpop.f32.mrf.mxu2  ;;  %654 = vmatpush.msra.mxu3 %v633_v10 }
  0xcb   :  { %v351_v26 = vadd.f32 %v350_v16, %v328_v19  ;;  %v627_v16 = vld [vmem:[%s1063_s7 + $0x8] sm:$0xff] }
  0xcc   :  { %655 = vmatpush.msra.mxu3 %v632_v11 }
  0xcd   :  { %v373_v20 = vpop.f32.mrf.mxu3 }
  0xce   :  { %v393_v22 = vpop.f32.mrf.mxu0  ;;  %v374_v31 = vadd.f32 %v373_v20, %v351_v26  ;;  %656 = vmatpush.msra.mxu3 %v631_v12  ;;  %v722_v26 = vld [vmem:[%s1062_s6] ss:$0 sm:$0xff] }
  0xcf   :  { %v394_v23 = vadd.f32 %v393_v22, %v371_v18 }
  0xd0   :  { %v416_v25 = vpop.f32.mrf.mxu1  ;;  %657 = vmatpush.msra.mxu3 %v630_v13 }
  0xd1   :  { %v417_v28 = vadd.f32 %v416_v25, %v394_v23 }
  0xd2   :  { %658 = vmatpush.msra.mxu3 %v629_v14 }
  0xd4   :  { %v439_v30 = vpop.f32.mrf.mxu2  ;;  %659 = vmatpush.msra.mxu3 %v628_v15 }
  0xd5   :  { %v440_v32 = vadd.f32 %v439_v30, %v417_v28 }
  0xd6   :  { %v396_v34 = vpop.f32.mrf.mxu0  ;;  %v462_v35 = vpop.f32.mrf.mxu3  ;;  %660 = vmatpush.msra.mxu3 %v627_v16 }
  0xd7   :  { %v397_v36 = vadd.f32 %v396_v34, %v374_v31  ;;  %v463_v37 = vadd.f32 %v462_v35, %v440_v32 }
  0xd8   :  { %v419_v39 = vpop.f32.mrf.mxu1  ;;  %661 = vmatpush.msra.mxu3 %v626_v17 }
  0xd9   :  { %v468_v40 = vmax.f32 %v463_v37, 0.0  ;;  %v420_v42 = vadd.f32 %v419_v39, %v397_v36 }
  0xdb   :  { %524 = vmatmul.f32.vlgmr.msra.gmra.mxu0 %v468_v40  ;;  %547 = vmatmul.f32.vlgmr.msra.gmra.mxu1 %v468_v40 }
  0xdc   :  { %v442_v43 = vpop.f32.mrf.mxu2 }
  0xdd   :  { %v443_v44 = vadd.f32 %v442_v43, %v420_v42  ;;  %v723_v43 = vld [vmem:[%s1064_s8] ss:$0 sm:$0xff] }
  0xde   :  { %v465_v45 = vpop.f32.mrf.mxu3 }
  0xdf   :  { %v466_v46 = vadd.f32 %v465_v45, %v443_v44 }
  0xe1   :  { %v469_v47 = vmax.f32 %v466_v46, 0.0 }
  0xe3   :  { %527 = vmatmul.f32.gmra.mxu0 %v469_v47  ;;  %550 = vmatmul.f32.gmra.mxu1 %v469_v47 }
 0x158   :  { %v525_v59 = vpop.f32.mrf.mxu0  ;;  %v548_v60 = vpop.f32.mrf.mxu1 }
 0x159   :  { %v526_v61 = vadd.f32 %v525_v59, %v504_v57  ;;  %v994_v62 = vadd.f32 %v548_v60, %v505_v58 }
 0x15b   :  { %v554_v63 = vmax.f32 %v526_v61, 0.0  ;;  %v557_v0 = vsel %vm556_vm0, %v994_v62, -inf }
 0x15c   :  { %558 = vmax.xlane.f32.xlu0 %v557_v0 }
 0x15d   :  { %617 = vmatmul.f32.vlgmr.msra.gmra.mxu2 %v554_v63 }
 0x160   :  { %v528_v1 = vpop.f32.mrf.mxu0  ;;  %v551_v2 = vpop.f32.mrf.mxu1 }
 0x161   :  { %v529_v3 = vadd.f32 %v528_v1, %v504_v57  ;;  %v998_v4 = vadd.f32 %v551_v2, %v505_v58 }
 0x163   :  { %v555_v5 = vmax.f32 %v529_v3, 0.0  ;;  %v560_v6 = vsel %vm556_vm0, %v998_v4, -inf }
 0x164   :  { %561 = vmax.xlane.f32.xlu0 %v560_v6 }
 0x165   :  { %620 = vmatmul.f32.gmra.mxu2 %v555_v5 }
 0x1cf   :  { %v559_v18 = vpop.xlane.xlu0 %558 }
 0x1d0   :  { %v563_v19 = vsub.f32 %v994_v62, %v559_v18 }
 0x1d2   :  { %v565_v20 = vmul.f32 1.442695, %v563_v19 }
 0x1d4   :  { %724 = vpow2.f32 %v565_v20 }
 0x1d7   :  { %v562_v21 = vpop.xlane.xlu0 %561 }
 0x1d8   :  { %v564_v22 = vsub.f32 %v998_v4, %v562_v21 }
 0x1da   :  { %v725_v23 = vpop.eup %724  ;;  %v567_v24 = vmul.f32 1.442695, %v564_v22 }
 0x1db   :  { %v569_v25 = vsel %vm556_vm0, %v725_v23, 0.0 }
 0x1dc   :  { %726 = vpow2.f32 %v567_v24  ;;  %570 = vadd.xlane.f32.xlu1 %v569_v25 }
 0x1e0   :  { %v618_v27 = vpop.f32.mrf.mxu2 }
 0x1e1   :  { %v619_v28 = vadd.f32 %v722_v26, %v618_v27 }
 0x1e2   :  { %v727_v29 = vpop.eup %726 }
 0x1e3   :  { %v624_v30 = vmax.f32 %v619_v28, 0.0  ;;  %v572_v31 = vsel %vm556_vm0, %v727_v29, 0.0 }
 0x1e4   :  { %573 = vadd.xlane.f32.xlu1 %v572_v31 }
 0x1e5   :  { %662 = vmatmul.f32.vlgmr.msra.gmra.mxu3 %v624_v30 }
 0x1e8   :  { %v621_v32 = vpop.f32.mrf.mxu2 }
 0x1e9   :  { %v622_v33 = vadd.f32 %v722_v26, %v621_v32 }
 0x1eb   :  { %v625_v34 = vmax.f32 %v622_v33, 0.0 }
 0x1ed   :  { %665 = vmatmul.f32.gmra.mxu3 %v625_v34 }
 0x24f   :  { %v571_v35 = vpop.xlane.xlu1 %570 }
 0x250   :  { %728 = vlog2.f32 %v571_v35 }
 0x256   :  { %v729_v36 = vpop.eup %728 }
 0x257   :  { %v574_v37 = vpop.xlane.xlu1 %573  ;;  %v576_v38 = vmul.f32 0.6931472, %v729_v36 }
 0x258   :  { %730 = vlog2.f32 %v574_v37 }
 0x259   :  { %v579_v39 = vsub.f32 %v563_v19, %v576_v38 }
 0x25b   :  { %671 = vrot.lane.b32.xlu2 %v579_v39, %s812_s18 }
 0x25e   :  { %v731_v40 = vpop.eup %730 }
 0x25f   :  { %v578_v41 = vmul.f32 0.6931472, %v731_v40 }
 0x261   :  { %v580_v42 = vsub.f32 %v564_v22, %v578_v41 }
 0x263   :  { %673 = vrot.lane.b32.xlu2 %v580_v42, %s812_s18 }
 0x268   :  { %v663_v44 = vpop.f32.mrf.mxu3 }
 0x269   :  { %v664_v45 = vadd.f32 %v723_v43, %v663_v44 }
 0x26b   :  { %679 = vrot.lane.b32.xlu0 %v664_v45, %s815_s22 }
 0x270   :  { %v666_v46 = vpop.f32.mrf.mxu3 }
 0x271   :  { %v667_v47 = vadd.f32 %v723_v43, %v666_v46 }
 0x273   :  { %681 = vrot.lane.b32.xlu1 %v667_v47, %s815_s22 }
 0x2b5   :  { %v672_v48 = vpop.permute.xlu2 %671 }
 0x2b6   :  { %v685_v49 = vsel %vm556_vm0, %v994_v62, %v672_v48 }
 0x2bd   :  { %v674_v52 = vpop.permute.xlu2 %673 }
 0x2be   :  { %v686_v53 = vsel %vm556_vm0, %v998_v4, %v674_v52 }
 0x2dd   :  { %v680_v50 = vpop.permute.xlu0 %679 }
 0x2de   :  { %v688_v51 = vsel %vm687_vm1, %v685_v49, %v680_v50 }
 0x2df   :  { %690 = vst [vmem:[#allocation7] sm:$0xff] %v688_v51 }
 0x2e5   :  { %v682_v54 = vpop.permute.xlu1 %681 }
 0x2e6   :  { %v689_v55 = vsel %vm687_vm1, %v686_v53, %v682_v54 }
 0x2e7   :  { %691 = vst [vmem:[#allocation7 + $0x8] sm:$0xff] %v689_v55 }
 0x2e8   :  { %695 = vsyncadd [#allocation4], 224  ;;  %s698_s22 = sshll.u32 %s1065_s9, 4  ;;  %s816_s30 = smov [#allocation7]   ;;  %s699_s22 = int_to_ptr.hbm [resolvable:$true] %s698_s22 }
 0x2e9   :  { %s696_s4 = sshll.u32 %s816_s30, 4  ;;  %s817_s10 = smov 32   ;;  %s697_s4 = int_to_ptr.vmem [resolvable:$true] %s696_s4 }
 0x2ea   :  { %s818_s0 = smov 2  }
 0x2eb   :  { %704 = dma.vmem_to_hbm [thread:$0]  %s697_s4, 32, %s699_s22, [#allocation4], %s817_s10, %s817_s10, %s818_s0  }
 0x2ec   :  { %808 = dma.done.wait [#allocation4], 256  }
 0x2ed   :  { %809 = vsyncadd [#allocation4], 4294967040 }
 0x2ee   :  { %709 = vsyncpa [#allocation3], 1 }
 0x2ef   :  { %710 = vsyncpa [#allocation6], 1 }
 0x2f0   :  { %711 = vsyncpa [#allocation4], 1 }

</bundles_post_ra>
